<compile_context>
chip_gen: v5e
topology: v5e:2x2
jax: 0.10.0
libtpu: 0.0.40
codegen_flags: <defaults>
</compile_context>

<pallas_src>
import jax
import jax.numpy as jnp
from jax.experimental import pallas as pl
from jax.experimental.pallas import tpu as pltpu


def multipool_kernel(comb_ref, b_ref, w_ref, x_ref, o_ref):
    # comb_ref: SMEM (3,)     -- softmaxed combination weights
    # b_ref:    SMEM (1,)     -- attention-pool linear bias
    # w_ref:    VMEM (1, H)   -- attention-pool linear weight, lane-dense
    # x_ref:    VMEM (TB, S, H) block of batch rows
    # o_ref:    VMEM (TB, H)  output block
    x = x_ref[...]                                   # (TB, S, H) f32
    w = w_ref[...]                                   # (1, H)

    # Attention scores: VPU multiply + lane reduction (avoids N=1 MXU matmul).
    scores = jnp.sum(x * w, axis=-1, keepdims=True) + b_ref[0]      # (TB, S, 1)

    # Softmax over the sequence axis (max-subtracted, f32).
    m = jnp.max(scores, axis=1, keepdims=True)                      # (TB, 1, 1)
    e = jnp.exp(scores - m)
    attn = e / jnp.sum(e, axis=1, keepdims=True)                    # (TB, S, 1)

    # Attention pool as a thin batched MXU contraction -> (TB, H) directly.
    attn_pool = jnp.einsum(
        "bsq,bsh->bqh", attn, x, preferred_element_type=jnp.float32
    )[:, 0, :]                                                      # (TB, H)

    max_pool = jnp.max(x, axis=1)                                   # (TB, H)
    mean_pool = jnp.sum(x, axis=1) * (1.0 / x.shape[1])             # (TB, H)

    out = (comb_ref[0] * attn_pool
           + comb_ref[1] * max_pool
           + comb_ref[2] * mean_pool)
    o_ref[...] = out.astype(o_ref.dtype)                            # lane-dense store


def multi_pooling(x, w_attn, b_attn, pool_weights, *, tb=8):
    """x: (B, S, H); w_attn: (H, 1); b_attn: (1,); pool_weights: (3,)."""
    B, S, H = x.shape
    comb = jax.nn.softmax(pool_weights.astype(jnp.float32), axis=0)  # (3,) tiny, plain JAX
    w_row = w_attn.reshape(1, H)                                     # lane-dense weight layout

    # Batch rows per grid step; pad B so every block is full (rows are
    # independent, padded rows are computed and discarded).
    TB = min(tb, B)
    n_blocks = pl.cdiv(B, TB)
    Bp = n_blocks * TB
    if Bp != B:
        x = jnp.pad(x, ((0, Bp - B), (0, 0), (0, 0)))

    # VMEM budget: double-buffered x block + output block + weights + slack.
    itemsize = x.dtype.itemsize
    x_block_bytes = TB * S * H * itemsize
    o_block_bytes = TB * H * itemsize
    vmem_limit = 2 * (x_block_bytes + o_block_bytes) + H * 4 + (2 << 20)
    vmem_limit = int(min(max(vmem_limit, 32 << 20), 64 << 20))

    out = pl.pallas_call(
        multipool_kernel,
        out_shape=jax.ShapeDtypeStruct((Bp, H), x.dtype),
        grid=(n_blocks,),
        in_specs=[
            pl.BlockSpec(memory_space=pltpu.SMEM),            # comb (3,)
            pl.BlockSpec(memory_space=pltpu.SMEM),            # bias (1,)
            pl.BlockSpec((1, H), lambda i: (0, 0)),           # w (1, H), full
            pl.BlockSpec((TB, S, H), lambda i: (i, 0, 0)),    # x: TB batch rows per step
        ],
        out_specs=pl.BlockSpec((TB, H), lambda i: (i, 0)),    # lane-dense 2-D output
        compiler_params=pltpu.CompilerParams(
            dimension_semantics=("parallel",),
            vmem_limit_bytes=vmem_limit),
    )(comb, b_attn, w_row, x)
    return out[:B]


def multi_pooling_ref(x, w_attn, b_attn, pool_weights):
    """Pure-JAX reference mirroring the PyTorch forward."""
    scores = jnp.einsum("bsh,ho->bso", x, w_attn) + b_attn          # (B, S, 1)
    attn = jax.nn.softmax(scores, axis=1)
    attn_pool = jnp.sum(attn * x, axis=1)                           # (B, H)
    max_pool = jnp.max(x, axis=1)
    mean_pool = jnp.mean(x, axis=1)
    w = jax.nn.softmax(pool_weights, axis=0)
    return w[0] * attn_pool + w[1] * max_pool + w[2] * mean_pool


if __name__ == "__main__":
    key = jax.random.PRNGKey(0)
    kx, kw, kb, kx2 = jax.random.split(key, 4)
    pool_weights = jnp.ones((3,), jnp.float32)  # torch.ones(3)

    # Case 1: small shapes consistent with the module (batch=2, seq=8, hidden=32).
    B, S, H = 2, 8, 32
    x = jax.random.normal(kx, (B, S, H), dtype=jnp.float32)
    bound = 1.0 / jnp.sqrt(H)
    w_attn = jax.random.uniform(kw, (H, 1), jnp.float32, -bound, bound)
    b_attn = jax.random.uniform(kb, (1,), jnp.float32, -bound, bound)

    out = jax.block_until_ready(multi_pooling(x, w_attn, b_attn, pool_weights))
    ref = multi_pooling_ref(x, w_attn, b_attn, pool_weights)
    assert out.shape == (B, H)
    assert jnp.allclose(out, ref, atol=1e-5, rtol=1e-5), "case1 mismatch vs reference"

    # Case 2: exercises TB=8 batching, a multi-step grid, and B-padding (B=20 -> 24).
    B2, S2, H2 = 20, 16, 128
    x2 = jax.random.normal(kx2, (B2, S2, H2), dtype=jnp.float32)
    bound2 = 1.0 / jnp.sqrt(H2)
    w2 = jax.random.uniform(kw, (H2, 1), jnp.float32, -bound2, bound2)
    b2 = jax.random.uniform(kb, (1,), jnp.float32, -bound2, bound2)

    out2 = jax.block_until_ready(multi_pooling(x2, w2, b2, pool_weights))
    ref2 = multi_pooling_ref(x2, w2, b2, pool_weights)
    assert out2.shape == (B2, H2)
    assert jnp.allclose(out2, ref2, atol=1e-4, rtol=1e-4), "case2 mismatch vs reference"

    print("KERNEL_OK")
</pallas_src>

<mosaic_0001>
module attributes {stable_mosaic.version = 11 : i64} {
  func.func @multipool_kernel(%arg0: i32, %arg1: memref<3xf32, #tpu.memory_space<smem>>, %arg2: memref<1xf32, #tpu.memory_space<smem>>, %arg3: memref<1x32xf32, #tpu.memory_space<vmem>>, %arg4: memref<2x8x32xf32, #tpu.memory_space<vmem>>, %arg5: memref<2x32xf32, #tpu.memory_space<vmem>>) attributes {dimension_semantics = [#tpu.dimension_semantics<parallel>], iteration_bounds = array<i64: 1>, scalar_prefetch = 0 : i64, scratch_operands = 0 : i64, tpu.core_type = #tpu.core_type<tc>, window_params = [{transform_indices = @transform_0, window_bounds = array<i64: 3>}, {transform_indices = @transform_1, window_bounds = array<i64: 1>}, {pipeline_mode = #tpu.pipeline_mode<synchronous>, transform_indices = @transform_2, window_bounds = array<i64: 1, 32>}, {transform_indices = @transform_3, window_bounds = array<i64: 2, 8, 32>}, {transform_indices = @transform_4, window_bounds = array<i64: 2, 32>}]} {
    %c0 = arith.constant 0 : index
    %c0_0 = arith.constant 0 : index
    %c0_1 = arith.constant 0 : index
    %0 = vector.load %arg4[%c0, %c0_0, %c0_1] : memref<2x8x32xf32, #tpu.memory_space<vmem>>, vector<2x8x32xf32>
    %c0_2 = arith.constant 0 : index
    %c0_3 = arith.constant 0 : index
    %1 = vector.load %arg3[%c0_2, %c0_3] : memref<1x32xf32, #tpu.memory_space<vmem>>, vector<1x32xf32>
    %2 = vector.shape_cast %1 : vector<1x32xf32> to vector<1x1x32xf32>
    %3 = vector.broadcast %2 : vector<1x1x32xf32> to vector<2x8x32xf32>
    %4 = arith.mulf %0, %3 : vector<2x8x32xf32>
    %cst = arith.constant dense<0.000000e+00> : vector<2x8xf32>
    %5 = vector.multi_reduction <add>, %4, %cst [2] : vector<2x8x32xf32> to vector<2x8xf32>
    %6 = vector.shape_cast %5 : vector<2x8xf32> to vector<2x8x1xf32>
    %c0_4 = arith.constant 0 : index
    %7 = memref.load %arg2[%c0_4] : memref<1xf32, #tpu.memory_space<smem>>
    %8 = vector.broadcast %7 : f32 to vector<2x8x1xf32>
    %9 = arith.addf %6, %8 : vector<2x8x1xf32>
    %cst_5 = arith.constant dense<0xFF800000> : vector<2x1xf32>
    %10 = vector.multi_reduction <maximumf>, %9, %cst_5 [1] : vector<2x8x1xf32> to vector<2x1xf32>
    %11 = vector.shape_cast %10 : vector<2x1xf32> to vector<2x1x1xf32>
    %12 = vector.broadcast %11 : vector<2x1x1xf32> to vector<2x8x1xf32>
    %13 = arith.subf %9, %12 : vector<2x8x1xf32>
    %14 = math.exp %13 : vector<2x8x1xf32>
    %cst_6 = arith.constant dense<0.000000e+00> : vector<2x1xf32>
    %15 = vector.multi_reduction <add>, %14, %cst_6 [1] : vector<2x8x1xf32> to vector<2x1xf32>
    %16 = vector.shape_cast %15 : vector<2x1xf32> to vector<2x1x1xf32>
    %17 = vector.broadcast %16 : vector<2x1x1xf32> to vector<2x8x1xf32>
    %18 = arith.divf %14, %17 : vector<2x8x1xf32>
    "tpu.trace_start"() <{level = 10 : i32, message = "bsq,bsh->bqh"}> : () -> ()
    %cst_7 = arith.constant dense<0.000000e+00> : vector<2x1x32xf32>
    %19 = tpu.matmul %18, %0, %cst_7 {dimension_numbers = #tpu.dot_dimension_numbers<[1], [1], [2], [2], [0, 0, 0, 2, 1, 2], [0], [0]>} : vector<2x8x1xf32>, vector<2x8x32xf32>, vector<2x1x32xf32> -> vector<2x1x32xf32>
    "tpu.trace_stop"() : () -> ()
    %20 = vector.shape_cast %19 : vector<2x1x32xf32> to vector<2x32xf32>
    %cst_8 = arith.constant dense<0xFF800000> : vector<2x32xf32>
    %21 = vector.multi_reduction <maximumf>, %0, %cst_8 [1] : vector<2x8x32xf32> to vector<2x32xf32>
    %cst_9 = arith.constant dense<0.000000e+00> : vector<2x32xf32>
    %22 = vector.multi_reduction <add>, %0, %cst_9 [1] : vector<2x8x32xf32> to vector<2x32xf32>
    %cst_10 = arith.constant 1.250000e-01 : f32
    %23 = vector.broadcast %cst_10 : f32 to vector<2x32xf32>
    %24 = arith.mulf %22, %23 : vector<2x32xf32>
    %c0_11 = arith.constant 0 : index
    %25 = memref.load %arg1[%c0_11] : memref<3xf32, #tpu.memory_space<smem>>
    %26 = vector.broadcast %25 : f32 to vector<2x32xf32>
    %27 = arith.mulf %26, %20 : vector<2x32xf32>
    %c1 = arith.constant 1 : index
    %28 = memref.load %arg1[%c1] : memref<3xf32, #tpu.memory_space<smem>>
    %29 = vector.broadcast %28 : f32 to vector<2x32xf32>
    %30 = arith.mulf %29, %21 : vector<2x32xf32>
    %31 = arith.addf %27, %30 : vector<2x32xf32>
    %c2 = arith.constant 2 : index
    %32 = memref.load %arg1[%c2] : memref<3xf32, #tpu.memory_space<smem>>
    %33 = vector.broadcast %32 : f32 to vector<2x32xf32>
    %34 = arith.mulf %33, %24 : vector<2x32xf32>
    %35 = arith.addf %31, %34 : vector<2x32xf32>
    %c0_12 = arith.constant 0 : index
    %c0_13 = arith.constant 0 : index
    %36 = vector.load %arg5[%c0_12, %c0_13] : memref<2x32xf32, #tpu.memory_space<vmem>>, vector<2x32xf32>
    tpu.vector_store %arg5[%c0_12, %c0_13], %35 {strides = array<i32>} : memref<2x32xf32, #tpu.memory_space<vmem>>, vector<2x32xf32>,
    return
  }
  func.func @transform_0(%arg0: i32) -> i32 {
    %c0_i32 = arith.constant 0 : i32
    %c0_i32_0 = arith.constant 0 : i32
    return %c0_i32 : i32
  }
  func.func @transform_1(%arg0: i32) -> i32 {
    %c0_i32 = arith.constant 0 : i32
    %c0_i32_0 = arith.constant 0 : i32
    return %c0_i32 : i32
  }
  func.func @transform_2(%arg0: i32) -> (i32, i32) {
    %c0_i32 = arith.constant 0 : i32
    %c0_i32_0 = arith.constant 0 : i32
    %c0_i32_1 = arith.constant 0 : i32
    return %c0_i32, %c0_i32_0 : i32, i32
  }
  func.func @transform_3(%arg0: i32) -> (i32, i32, i32) {
    %c0_i32 = arith.constant 0 : i32
    %c0_i32_0 = arith.constant 0 : i32
    %c0_i32_1 = arith.constant 0 : i32
    return %arg0, %c0_i32, %c0_i32_0 : i32, i32, i32
  }
  func.func @transform_4(%arg0: i32) -> (i32, i32) {
    %c0_i32 = arith.constant 0 : i32
    %c0_i32_0 = arith.constant 0 : i32
    return %arg0, %c0_i32 : i32, i32
  }
}

</mosaic_0001>

<bundles_post_ra>
// kernel: tpu_custom_call.1
= control target key start
LH: loop header
LB: loop body
LE: loop exit
PB: predicated region body
PF: predicated region fallthrough
CT: control target
= control target key end

     0   :  { %10 = vsyncpa [#allocation6], 0  ;;  %s456_s0 = inlined_call_operand.vmem [shape: f32[3], index: 0, kind: input, shape index: {}]   ;;  %s457_s1 = inlined_call_operand.<no memory space> [shape: f32[1], index: 1, kind: input, shape index: {}]   ;;  %s458_s2 = inlined_call_operand.vmem [shape: f32[1,32], index: 2, kind: input, shape index: {}]   ;;  %s459_s3 = inlined_call_operand.hbm [shape: f32[2,8,32], index: 3, kind: input, shape index: {}]   ;;  %s460_s4 = inlined_call_operand.hbm [shape: f32[2,32], index: 4, kind: output, shape index: {}]  }
   0x1   :  { %11 = vsyncpa [#allocation4], 0 }
   0x2   :  { %12 = vsyncpa [#allocation5], 0  ;;  %s18_s17 = sshll.u32 %s456_s0, 4  ;;  %s30_s20 = sshll.u32 %s459_s3, 4  ;;  %s19_s17 = int_to_ptr.vmem [resolvable:$true] %s18_s17  ;;  %s31_s20 = int_to_ptr.hbm [resolvable:$true] %s30_s20 }
   0x3   :  { %s395_s21 = smov [#allocation3]   ;;  %s396_s22 = smov [#allocation7]  }
   0x4   :  { %21 = dma.vmem_to_smem %s19_s17, 16, %s395_s21, [#allocation6]  }
   0x5   :  { %s32_s23 = sshll.u32 %s396_s22, 4  ;;  %s397_s24 = smov 128   ;;  %s33_s23 = int_to_ptr.vmem [resolvable:$true] %s32_s23 }
   0x6   :  { %s398_s25 = smov 8  }
   0x7   :  { %38 = dma.hbm_to_vmem [thread:$0]  %s31_s20, 256, %s33_s23, [#allocation4], %s397_s24, %s397_s24, %s398_s25  }
   0x8   :  { %389 = dma.done.wait [#allocation6], 16  }
   0x9   :  { %390 = vsyncadd [#allocation6], 4294967280 }
   0xa   :  { %391 = dma.done.wait [#allocation4], 256  }
   0xb   :  { %392 = vsyncadd [#allocation4], 4294967040 }
   0xc   :  { %47 = sfence }
   0xd   :  { %v49_v0 = vld [vmem:[#allocation7 + $0x8] sm:$0xff]  ;;  %v320_v1 = vld [vmem:[%s458_s2] ss:$0 sm:$0xff]  ;;  %vm56_vm0 = vcmask 261120   ;;  %v64_v11 = vstv %s457_s1  ;;  %vm159_vm9 = vcmask 64512   ;;  %s312_s1 = sld [smem:[#allocation3 + $0x1]] }
   0xe   :  { %v434_v2 = vsel %vm56_vm0, %v49_v0, -inf  ;;  %v436_v3 = vsel %vm56_vm0, %v49_v0, 0.0  ;;  %v48_v4 = vld [vmem:[#allocation7] sm:$0xff]  ;;  %233 = vmatpush.msra.mxu1 %v49_v0  ;;  %v55_v5 = vmul.f32 %v320_v1, %v49_v0  ;;  %s268_s27 = sld [smem:[#allocation3]]  ;;  %s399_s29 = smov [#allocation8]   ;;  %vm287_vm10 = vcmask 1041409  }
   0xf   :  { %178 = vmatpush.msra.mxu0 %v48_v4  ;;  %v438_v6 = vsel %vm56_vm0, %v48_v4, -inf  ;;  %v440_v7 = vsel %vm56_vm0, %v48_v4, 0.0  ;;  %v54_v9 = vmul.f32 %v320_v1, %v48_v4  ;;  %s313_s28 = sld [smem:[#allocation3 + $0x2]]  ;;  %s297_s30 = sshll.u32 %s399_s29, 4  ;;  %vm290_vm11 = vcmask 254976   ;;  %s298_s30 = int_to_ptr.vmem [resolvable:$true] %s297_s30 }
  0x10   :  { %v60_v8 = vsel %vm56_vm0, %v55_v5, 0.0  ;;  %s299_s7 = sshll.u32 %s460_s4, 4  ;;  %s300_s7 = int_to_ptr.hbm [resolvable:$true] %s299_s7 }
  0x11   :  { %61 = vadd.xlane.f32.xlu0 %v60_v8  ;;  %v57_v10 = vsel %vm56_vm0, %v54_v9, 0.0 }
  0x19   :  { %58 = vadd.xlane.f32.xlu0 %v57_v10  ;;  %v260_v10 = vrot.slane %v436_v3, 4 }
  0x84   :  { %v62_v12 = vpop.xlane.xlu0 %61 }
  0x85   :  { %v66_v13 = vadd.f32 %v64_v11, %v62_v12  ;;  %v261_v12 = vadd.f32 %v260_v10, %v436_v3 }
  0x87   :  { %v73_v14 = vrot.slane %v66_v13, 4 }
  0x89   :  { %v74_v15 = vmax.f32 %v66_v13, %v73_v14  ;;  %v262_v14 = vrot.slane %v261_v12, 2 }
  0x8b   :  { %v75_v16 = vrot.slane %v74_v15, 2 }
  0x8c   :  { %v59_v17 = vpop.xlane.xlu0 %58 }
  0x8d   :  { %v76_v18 = vmax.f32 %v74_v15, %v75_v16  ;;  %v65_v19 = vadd.f32 %v64_v11, %v59_v17  ;;  %v246_v11 = vrot.slane %v434_v2, 4  ;;  %v253_v15 = vrot.slane %v440_v7, 4 }
  0x8e   :  { %v239_v17 = vrot.slane %v438_v6, 4 }
  0x8f   :  { %v77_v20 = vrot.slane %v76_v18, 1  ;;  %v67_v21 = vrot.slane %v65_v19, 4 }
  0x91   :  { %v78_v22 = vmax.f32 %v76_v18, %v77_v20  ;;  %v68_v23 = vmax.f32 %v65_v19, %v67_v21  ;;  %v263_v18 = vadd.f32 %v262_v14, %v261_v12  ;;  %v240_v21 = vmax.f32 %v438_v6, %v239_v17 }
  0x93   :  { %v80_v24 = vsub.f32 %v66_v13, %v78_v22  ;;  %v69_v25 = vrot.slane %v68_v23, 2  ;;  %v247_v13 = vmax.f32 %v434_v2, %v246_v11  ;;  %v264_v22 = vrot.slane %v263_v18, 1 }
  0x95   :  { %v83_v26 = vmul.f32 1.442695, %v80_v24  ;;  %v70_v27 = vmax.f32 %v68_v23, %v69_v25  ;;  %v248_v16 = vrot.slane %v247_v13, 2  ;;  %v241_v24 = vrot.slane %v240_v21, 2 }
  0x96   :  { %v265_v2 = vadd.f32 %v264_v22, %v263_v18 }
  0x97   :  { %321 = vpow2.f32 %v83_v26  ;;  %v71_v28 = vrot.slane %v70_v27, 1  ;;  %v249_v20 = vmax.f32 %v247_v13, %v248_v16 }
  0x99   :  { %v72_v29 = vmax.f32 %v70_v27, %v71_v28  ;;  %v250_v3 = vrot.slane %v249_v20, 1  ;;  %v273_v27 = vstv %s312_s1  ;;  %v242_v28 = vmax.f32 %v240_v21, %v241_v24 }
  0x9b   :  { %v79_v30 = vsub.f32 %v65_v19, %v72_v29  ;;  %v254_v19 = vadd.f32 %v253_v15, %v440_v7  ;;  %v251_v26 = vmax.f32 %v249_v20, %v250_v3  ;;  %v267_v29 = vmul.f32 0.125, %v265_v2 }
  0x9d   :  { %v322_v31 = vpop.eup %321  ;;  %v81_v32 = vmul.f32 1.442695, %v79_v30  ;;  %v255_v23 = vrot.slane %v254_v19, 2  ;;  %v269_v30 = vstv %s268_s27  ;;  %v275_v7 = vmul.f32 %v273_v27, %v251_v26 }
  0x9e   :  { %v91_v33 = vrot.slane %v322_v31, 4 }
  0x9f   :  { %323 = vpow2.f32 %v81_v32  ;;  %v256_v25 = vadd.f32 %v255_v23, %v254_v19 }
  0xa0   :  { %v92_v34 = vadd.f32 %v322_v31, %v91_v33 }
  0xa1   :  { %v257_v32 = vrot.slane %v256_v25, 1 }
  0xa2   :  { %v93_v35 = vrot.slane %v92_v34, 2 }
  0xa4   :  { %v94_v36 = vadd.f32 %v93_v35, %v92_v34  ;;  %v243_v34 = vrot.slane %v242_v28, 1 }
  0xa5   :  { %v324_v37 = vpop.eup %323 }
  0xa6   :  { %v85_v38 = vrot.slane %v324_v37, 4  ;;  %v95_v39 = vrot.slane %v94_v36, 1 }
  0xa8   :  { %v96_v40 = vadd.f32 %v95_v39, %v94_v36  ;;  %v86_v41 = vadd.f32 %v324_v37, %v85_v38  ;;  %v258_v36 = vadd.f32 %v257_v32, %v256_v25  ;;  %v244_v38 = vmax.f32 %v242_v28, %v243_v34 }
  0xaa   :  { %325 = vrcp.f32 %v96_v40  ;;  %v87_v42 = vrot.slane %v86_v41, 2  ;;  %v123_v49 = vand.u32 2147483648, %v96_v40  ;;  %v121_v51 = vand.u32 2147483647, %v96_v40 }
  0xab   :  { %vm117_vm2 = vweird.f32 %v96_v40 }
  0xac   :  { %v88_v43 = vadd.f32 %v87_v42, %v86_v41  ;;  %v124_v53 = vor.u32 1.1754944e-38, %v123_v49  ;;  %vm122_vm4 = vcmp.eq.f32.partialorder %v121_v51, 8.507059e+37  ;;  %v274_v41 = vmul.f32 %v273_v27, %v244_v38 }
  0xae   :  { %v89_v44 = vrot.slane %v88_v43, 1 }
  0xb0   :  { %v326_v45 = vpop.eup %325  ;;  %v90_v47 = vadd.f32 %v89_v44, %v88_v43 }
  0xb1   :  { %v113_v46 = vmul.f32 %v326_v45, %v96_v40  ;;  %vm118_vm1 = vweird.f32 %v326_v45  ;;  %v266_v40 = vmul.f32 0.125, %v258_v36 }
  0xb2   :  { %327 = vrcp.f32 %v90_v47  ;;  %vm119_vm3 = vmor %vm117_vm2, %vm118_vm1  ;;  %v108_v60 = vand.u32 2147483648, %v90_v47  ;;  %v106_v62 = vand.u32 2147483647, %v90_v47  ;;  %vm102_vm6 = vweird.f32 %v90_v47 }
  0xb3   :  { %v114_v48 = vsub.f32 1.0, %v113_v46 }
  0xb4   :  { %v109_v0 = vor.u32 1.1754944e-38, %v108_v60  ;;  %vm107_vm8 = vcmp.eq.f32.partialorder %v106_v62, 8.507059e+37 }
  0xb5   :  { %v115_v50 = vmul.f32 %v326_v45, %v114_v48 }
  0xb7   :  { %v116_v52 = vadd.f32 %v326_v45, %v115_v50 }
  0xb8   :  { %v328_v54 = vpop.eup %327 }
  0xb9   :  { %v120_v55 = vsel %vm119_vm3, %v326_v45, %v116_v52  ;;  %v98_v57 = vmul.f32 %v328_v54, %v90_v47  ;;  %vm103_vm5 = vweird.f32 %v328_v54 }
  0xba   :  { %v125_v56 = vsel %vm122_vm4, %v124_v53, %v120_v55  ;;  %vm104_vm7 = vmor %vm102_vm6, %vm103_vm5 }
  0xbb   :  { %v126_v58 = vmul.f32 %v322_v31, %v125_v56  ;;  %v99_v59 = vsub.f32 1.0, %v98_v57  ;;  %v279_v31 = vstv %s313_s28 }
  0xbc   :  { %v281_v6 = vmul.f32 %v279_v31, %v267_v29  ;;  %v280_v44 = vmul.f32 %v279_v31, %v266_v40 }
  0xbd   :  { %183 = vxpose.xlu1.b32.start.end [1/1] (short) (narrow) %v126_v58, 8  ;;  %v100_v61 = vmul.f32 %v328_v54, %v99_v59 }
  0xbf   :  { %v101_v63 = vadd.f32 %v328_v54, %v100_v61 }
  0xc1   :  { %v105_v1 = vsel %vm104_vm7, %v328_v54, %v101_v63 }
  0xc2   :  { %v110_v4 = vsel %vm107_vm8, %v109_v0, %v105_v1 }
  0xc3   :  { %v111_v5 = vmul.f32 %v324_v37, %v110_v4 }
  0xc5   :  { %127 = vxpose.xlu1.b32.start.end [1/1] (short) (narrow) %v111_v5, 8 }
 0x161   :  { %v199_v8 = vpop.trf.xlu1 }
 0x162   :  { %311 = vmatmul.msk.f32.vlgmr.msra.gmra.mxu1 %vm159_vm9, %v199_v8 }
 0x169   :  { %v143_v9 = vpop.trf.xlu1 }
 0x16a   :  { %310 = vmatmul.msk.f32.vlgmr.msra.gmra.mxu0 %vm159_vm9, %v143_v9 }
 0x1df   :  { %v235_v33 = vpop.f32.mrf.mxu1 }
 0x1e0   :  { %v271_v35 = vmul.f32 %v269_v30, %v235_v33 }
 0x1e2   :  { %v277_v37 = vadd.f32 %v275_v7, %v271_v35 }
 0x1e4   :  { %v283_v39 = vadd.f32 %v281_v6, %v277_v37 }
 0x1e6   :  { %v286_v46 = vrot.slane %v283_v39, 7 }
 0x1e7   :  { %v180_v42 = vpop.f32.mrf.mxu0 }
 0x1e8   :  { %v270_v43 = vmul.f32 %v269_v30, %v180_v42 }
 0x1ea   :  { %v276_v45 = vadd.f32 %v274_v41, %v270_v43 }
 0x1ec   :  { %v282_v47 = vadd.f32 %v280_v44, %v276_v45 }
 0x1ee   :  { %v288_v48 = vsel %vm287_vm10, %v286_v46, %v282_v47 }
 0x1ef   :  { %291 = vst.msk [vmem:[#allocation8] sm:$0x3] %vm290_vm11, %v288_v48 }
 0x1f0   :  { %302 = dma.vmem_to_hbm [thread:$0]  %s298_s30, 32, %s300_s7, [#allocation5]  }
 0x1f1   :  { %393 = dma.done.wait [#allocation5], 32  }
 0x1f2   :  { %394 = vsyncadd [#allocation5], 4294967264 }
 0x1f3   :  { %307 = vsyncpa [#allocation4], 1 }
 0x1f4   :  { %308 = vsyncpa [#allocation5], 1 }
 0x1f5   :  { %309 = vsyncpa [#allocation6], 1 }

</bundles_post_ra>
